<compile_context>
chip_gen: v6e
topology: v6e:2x2x1
jax: 0.10.0
libtpu: 0.0.40
codegen_flags: <defaults>
</compile_context>

<pallas_src>
import math
import jax
import jax.numpy as jnp
from jax.experimental import pallas as pl
from jax.experimental.pallas import tpu as pltpu


def _add_pe_kernel(x_ref, pe_ref, o_ref):
    # x_ref/pe_ref/o_ref: (TR, C) tiles. PE tile is pre-broadcast in the
    # wrapper, so this is a pure full-tile VPU add (no per-step broadcast).
    o_ref[...] = x_ref[...] + pe_ref[...]


def make_pe_table(embed_dim: int, max_positions: int) -> jnp.ndarray:
    """Build the sinusoidal PE buffer exactly like the PyTorch __init__."""
    position = jnp.arange(max_positions, dtype=jnp.float32)[:, None]          # (P, 1)
    div_term = jnp.exp(
        jnp.arange(0, embed_dim, 2, dtype=jnp.float32)
        * (-math.log(10000.0) / embed_dim)
    )                                                                          # (D/2,)
    pe = jnp.zeros((1, max_positions, embed_dim), dtype=jnp.float32)
    pe = pe.at[0, :, 0::2].set(jnp.sin(position * div_term))
    pe = pe.at[0, :, 1::2].set(jnp.cos(position * div_term))
    return pe


def positional_encoding_forward(
    x: jnp.ndarray,
    pe: jnp.ndarray,
    *,
    target_tile_bytes: int = 2 * 1024 * 1024,
) -> jnp.ndarray:
    """x: [B, L, D], pe: [1, max_positions, D].  Returns x + pe[:, L] (eval-mode dropout)."""
    B, L, D = x.shape
    max_positions = pe.shape[1]
    if L >= max_positions:
        raise ValueError(
            f"seq_len ({L}) must be < max_positions ({max_positions}) because the "
            "module indexes pe[:, seq_len]."
        )

    # Single PE row at index L (PyTorch semantics), cast once to x.dtype.
    pe_row = pe[0, L, :].astype(x.dtype)  # (D,)

    itemsize = jnp.dtype(x.dtype).itemsize
    n_elems = B * L * D

    # ---- choose a lane-dense 2-D working layout (R rows, C lanes) ----
    if D % 128 == 0:
        # Already lane-dense: rows are (batch*seq), lanes are embed_dim.
        R, C = B * L, D
        pe_lane = pe_row                                  # (C,)
    elif (128 % D == 0) and (n_elems % 128 == 0):
        # Repack to 128 lanes; PE pattern repeats every D lanes, identical on
        # every row because 128 % D == 0.
        R, C = n_elems // 128, 128
        pe_lane = jnp.tile(pe_row, 128 // D)              # (128,)
    else:
        # Fallback: correct for any D (may use masked partial stores).
        R, C = B * L, D
        pe_lane = pe_row

    x2 = x.reshape(R, C)

    # ---- row-tile size: ~target_tile_bytes per buffer, sublane-aligned ----
    sublane = max(8, 32 // itemsize)                      # 8 (f32), 16 (bf16), 32 (int8)
    tr = (target_tile_bytes // (C * itemsize)) // sublane * sublane
    tr = max(sublane, tr)
    if tr >= R:
        tr = R                                            # single full-extent block
    grid = (pl.cdiv(R, tr),)

    # PE broadcast hoisted out of the hot loop: one resident (tr, C) tile.
    pe_tile = jnp.broadcast_to(pe_lane[None, :], (tr, C))

    out2 = pl.pallas_call(
        _add_pe_kernel,
        out_shape=jax.ShapeDtypeStruct((R, C), x.dtype),
        grid_spec=pltpu.PrefetchScalarGridSpec(
            num_scalar_prefetch=0,
            grid=grid,
            in_specs=[
                pl.BlockSpec((tr, C), lambda r: (r, 0)),   # x tile marches over rows
                pl.BlockSpec((tr, C), lambda r: (0, 0)),   # PE tile stays resident
            ],
            out_specs=pl.BlockSpec((tr, C), lambda r: (r, 0)),
        ),
        compiler_params=pltpu.CompilerParams(
            dimension_semantics=("parallel",),
            vmem_limit_bytes=32 * 1024 * 1024,
        ),
    )(x2, pe_tile)

    # TODO(synk): training-mode dropout (pltpu.prng_seed + prng_random_bits mask and
    # 1/(1-p) scale) not implemented; inference-mode dropout is the identity.
    return out2.reshape(B, L, D)


if __name__ == "__main__":
    # Small shapes consistent with the forward: [batch, sent_len, embed_dim]
    batch, seq_len, embed_dim = 2, 8, 32
    max_positions = 16  # must be > seq_len since forward indexes pe[:, seq_len]
    dropout_p = 0.1     # unused at inference

    key = jax.random.PRNGKey(0)
    x = jax.random.normal(key, (batch, seq_len, embed_dim), dtype=jnp.float32)

    pe = make_pe_table(embed_dim, max_positions)

    out = positional_encoding_forward(x, pe)
    out = jax.block_until_ready(out)

    # Reference check in plain JAX (same math as the PyTorch forward).
    ref = x + pe[0, seq_len, :][None, None, :]
    assert out.shape == (batch, seq_len, embed_dim)
    assert jnp.allclose(out, ref, atol=1e-6), "mismatch vs reference"

    print("KERNEL_OK")
</pallas_src>

<mosaic_0001>
module attributes {stable_mosaic.version = 11 : i64} {
  func.func @_add_pe_kernel(%arg0: i32, %arg1: memref<4x128xf32, #tpu.memory_space<vmem>>, %arg2: memref<4x128xf32, #tpu.memory_space<vmem>>, %arg3: memref<4x128xf32, #tpu.memory_space<vmem>>) attributes {dimension_semantics = [#tpu.dimension_semantics<parallel>], iteration_bounds = array<i64: 1>, scalar_prefetch = 0 : i64, scratch_operands = 0 : i64, tpu.core_type = #tpu.core_type<tc>, window_params = [{transform_indices = @transform_0, window_bounds = array<i64: 4, 128>}, {pipeline_mode = #tpu.pipeline_mode<synchronous>, transform_indices = @transform_1, window_bounds = array<i64: 4, 128>}, {transform_indices = @transform_2, window_bounds = array<i64: 4, 128>}]} {
    %c0 = arith.constant 0 : index
    %c0_0 = arith.constant 0 : index
    %0 = vector.load %arg1[%c0, %c0_0] : memref<4x128xf32, #tpu.memory_space<vmem>>, vector<4x128xf32>
    %c0_1 = arith.constant 0 : index
    %c0_2 = arith.constant 0 : index
    %1 = vector.load %arg2[%c0_1, %c0_2] : memref<4x128xf32, #tpu.memory_space<vmem>>, vector<4x128xf32>
    %2 = arith.addf %0, %1 : vector<4x128xf32>
    %c0_3 = arith.constant 0 : index
    %c0_4 = arith.constant 0 : index
    %3 = vector.load %arg3[%c0_3, %c0_4] : memref<4x128xf32, #tpu.memory_space<vmem>>, vector<4x128xf32>
    tpu.vector_store %arg3[%c0_3, %c0_4], %2 {strides = array<i32>} : memref<4x128xf32, #tpu.memory_space<vmem>>, vector<4x128xf32>,
    return
  }
  func.func @transform_0(%arg0: i32) -> (i32, i32) {
    %c0_i32 = arith.constant 0 : i32
    %c0_i32_0 = arith.constant 0 : i32
    return %arg0, %c0_i32 : i32, i32
  }
  func.func @transform_1(%arg0: i32) -> (i32, i32) {
    %c0_i32 = arith.constant 0 : i32
    %c0_i32_0 = arith.constant 0 : i32
    %c0_i32_1 = arith.constant 0 : i32
    return %c0_i32, %c0_i32_0 : i32, i32
  }
  func.func @transform_2(%arg0: i32) -> (i32, i32) {
    %c0_i32 = arith.constant 0 : i32
    %c0_i32_0 = arith.constant 0 : i32
    return %arg0, %c0_i32 : i32, i32
  }
}

</mosaic_0001>

<bundles_post_ra>
// kernel: tpu_custom_call.1
= control target key start
LH: loop header
LB: loop body
LE: loop exit
PB: predicated region body
PF: predicated region fallthrough
CT: control target
= control target key end

     0   :  { %7 = vsyncpa [#allocation3], 0  ;;  %s152_s0 = inlined_call_operand.hbm [shape: f32[4,128], index: 0, kind: input, shape index: {}]   ;;  %s153_s1 = inlined_call_operand.hbm [shape: f32[4,128], index: 1, kind: input, shape index: {}]   ;;  %s154_s2 = inlined_call_operand.hbm [shape: f32[4,128], index: 2, kind: output, shape index: {}]  }
   0x1   :  { %8 = vsyncpa [#allocation6], 0 }
   0x2   :  { %9 = vsyncpa [#allocation4], 0  ;;  %s125_s9 = smov [#allocation2]   ;;  %s126_s11 = smov [#allocation5]  }
   0x3   :  { %s16_s10 = sshll.u32 %s125_s9, 4  ;;  %s26_s12 = sshll.u32 %s126_s11, 4  ;;  %s17_s10 = int_to_ptr.vmem [resolvable:$true] %s16_s10  ;;  %s27_s12 = int_to_ptr.vmem [resolvable:$true] %s26_s12 }
   0x4   :  { %s67_s13 = scalar_lea.vmem %s17_s10, 64  ;;  %p72_p1 = scmp.lt.s32.totalorder %s17_s10, %s17_s10 }
   0x5   :  { %p68_p0 = scmp.ne.s32.totalorder %s17_s10, %s67_s13  ;;  %p73_p2 = scmp.lt.s32.totalorder %s67_s13, %s67_s13 }
   0x7   :  { %p74_p3 = por %p73_p2, %p72_p1 }
   0x9   :  { %p75_p4 = pnand %p74_p3, %p68_p0 }
   0xb   :  { %78 = shalt.err (!%p75_p4)
}
   0xc   :  { %19 = dma.hbm_to_vmem [thread:$0]  %s152_s0, 64, %s17_s10, [#allocation3]  }
   0xd   :  { %s87_s16 = scalar_lea.vmem %s27_s12, 64  ;;  %p92_p6 = scmp.lt.s32.totalorder %s27_s12, %s27_s12 }
   0xe   :  { %p88_p5 = scmp.ne.s32.totalorder %s27_s12, %s87_s16  ;;  %p93_p7 = scmp.lt.s32.totalorder %s87_s16, %s87_s16 }
  0x10   :  { %p94_p8 = por %p93_p7, %p92_p6 }
  0x12   :  { %p95_p9 = pnand %p94_p8, %p88_p5 }
  0x14   :  { %98 = shalt.err (!%p95_p9)
}
  0x15   :  { %29 = dma.hbm_to_vmem [thread:$0]  %s153_s1, 64, %s27_s12, [#allocation6]  }
  0x16   :  { %119 = dma.done.wait [#allocation3], 64  }
  0x17   :  { %120 = vsyncadd [#allocation3], 4294967232 }
  0x18   :  { %121 = dma.done.wait [#allocation6], 64  }
  0x19   :  { %122 = vsyncadd [#allocation6], 4294967232  ;;  %s127_s19 = smov [#allocation7]   ;;  %v36_v0 = vld [vmem:[#allocation2] sm:$0xf] }
  0x1a   :  { %s46_s20 = sshll.u32 %s127_s19, 4  ;;  %v37_v1 = vld [vmem:[#allocation5] sm:$0xf]  ;;  %s47_s20 = int_to_ptr.vmem [resolvable:$true] %s46_s20 }
  0x1b   :  { %v38_v2 = vadd.f32 %v37_v1, %v36_v0  ;;  %s99_s0 = scalar_lea.vmem %s47_s20, 64  ;;  %p104_p11 = scmp.lt.s32.totalorder %s47_s20, %s47_s20 }
  0x1c   :  { %p100_p10 = scmp.ne.s32.totalorder %s47_s20, %s99_s0  ;;  %p105_p12 = scmp.lt.s32.totalorder %s99_s0, %s99_s0 }
  0x1d   :  { %39 = vst [vmem:[#allocation7] sm:$0xf] %v38_v2 }
  0x1e   :  { %p106_p13 = por %p105_p12, %p104_p11 }
  0x20   :  { %p107_p0 = pnand %p106_p13, %p100_p10 }
  0x22   :  { %110 = shalt.err (!%p107_p0)
}
  0x23   :  { %49 = dma.vmem_to_hbm [thread:$0]  %s47_s20, 64, %s154_s2, [#allocation4]  }
  0x24   :  { %123 = dma.done.wait [#allocation4], 64  }
  0x25   :  { %124 = vsyncadd [#allocation4], 4294967232 }
  0x26   :  { %53 = vsyncpa [#allocation3], 1 }
  0x27   :  { %54 = vsyncpa [#allocation6], 1 }
  0x28   :  { %55 = vsyncpa [#allocation4], 1 }

</bundles_post_ra>
